<compile_context>
chip_gen: v5e
topology: v5e:2x2
jax: 0.10.0
libtpu: 0.0.40
codegen_flags: <defaults>
</compile_context>

<pallas_src>
import functools

import jax
import jax.numpy as jnp
from jax.experimental import pallas as pl
from jax.experimental.pallas import tpu as pltpu


def _conv2d_relu_kernel(x_ref, w_ref, b_ref, o_ref, *, kh, kw, ow, cin, th, stride):
    """One output row-block of one image per grid step.

    x_ref: (1, Hp, Wp, Cin)        padded NHWC image (bf16/f32), resident
                                   across all row blocks of the same image
    w_ref: (KH*KW*Cin, Cstore)     im2col weight matrix (bf16/f32)
    b_ref: (1, Cstore)             bias row (f32)
    o_ref: (1, TH*OW, Cstore)      flat output row-block
    """
    r = pl.program_id(1)                       # row-block index within the image
    row0 = r * (th * stride)                   # first padded-input row of this block

    # Build the (TH*OW, KH*KW*Cin) im2col LHS entirely in VMEM (never in HBM).
    taps = []
    for i in range(kh):
        for j in range(kw):
            if stride == 1:
                tap = x_ref[0, pl.ds(row0 + i, th), pl.ds(j, ow), :]
            else:
                tap = x_ref[0, pl.ds(row0 + i, th, stride),
                            pl.ds(j, ow, stride), :]
            taps.append(tap)                   # (TH, OW, Cin)
    lhs = jnp.concatenate(taps, axis=-1)       # (TH, OW, KH*KW*Cin)
    lhs = lhs.reshape(th * ow, kh * kw * cin)  # collapse rows (vreg-friendly)

    # Single MXU launch; f32 accumulate, f32 bias + ReLU epilogue (v5e-safe).
    acc = jnp.dot(lhs, w_ref[...], preferred_element_type=jnp.float32)
    acc = acc + b_ref[...]
    o_ref[0] = jnp.maximum(acc, 0.0).astype(o_ref.dtype)


def _pick_num_row_blocks(oh, ow, n_images, min_rows=64):
    """Divisor of OH giving >= 4 total grid steps (>= 2 per TensorCore on a
    dual-core chip) while keeping each output row-block sublane-aligned."""
    best = 1
    for nb in range(2, oh + 1):
        if oh % nb:
            continue
        rows = (oh // nb) * ow
        if rows % 8 != 0 or rows < min_rows:
            continue
        best = nb
        if n_images * nb >= 4:
            break
    return best


@functools.partial(jax.jit, static_argnames=("stride", "compute_dtype", "out_dtype"))
def warmup_conv_forward(x_nchw, weight, bias, *, stride=1,
                        compute_dtype=jnp.bfloat16, out_dtype=None):
    """Conv2d(padding=kernel_size//2, stride) + ReLU.

    x_nchw : (N, Cin, H, W)      float32 (PyTorch layout)
    weight : (Cout, Cin, KH, KW) float32 (PyTorch layout)
    bias   : (Cout,)             float32
    returns: (N, Cout, OH, OW)   out_dtype (defaults to x dtype)

    Streamed operands are cast to `compute_dtype` (default bfloat16); the
    matmul accumulation, bias add and ReLU run in float32.  Pass
    out_dtype=jnp.bfloat16 to halve output HBM write bytes when the consumer
    is bf16.
    """
    n, cin, h, w = x_nchw.shape
    cout, cin_w, kh, kw = weight.shape
    assert cin == cin_w, (cin, cin_w)
    out_dtype = x_nchw.dtype if out_dtype is None else jnp.dtype(out_dtype)
    pad_h, pad_w = kh // 2, kw // 2

    # --- input glue: one fused XLA pass (transpose + cast + halo pad) ---
    x_nhwc = jnp.transpose(x_nchw, (0, 2, 3, 1)).astype(compute_dtype)
    xp = jnp.pad(x_nhwc, ((0, 0), (pad_h, pad_h), (pad_w, pad_w), (0, 0)))
    hp, wp = h + 2 * pad_h, w + 2 * pad_w

    oh = (hp - kh) // stride + 1
    ow = (wp - kw) // stride + 1
    m = oh * ow

    # Output channel handling: pad to lane width only when Cout is large;
    # small Cout keeps its true width (masked store, 1x write bytes, no slice).
    if cout % 128 == 0 or cout < 128:
        c_store = cout
    else:
        c_store = ((cout + 127) // 128) * 128

    # weight (Cout, Cin, KH, KW) -> (KH*KW*Cin, Cstore); rows ordered (i, j, ci)
    # to match the tap concatenation order in the kernel.
    kdim = kh * kw * cin
    w_mat = jnp.transpose(weight, (2, 3, 1, 0)).reshape(kdim, cout)
    b_row = bias.reshape(1, cout).astype(jnp.float32)
    if c_store != cout:
        w_mat = jnp.pad(w_mat, ((0, 0), (0, c_store - cout)))
        b_row = jnp.pad(b_row, ((0, 0), (0, c_store - cout)))
    w_mat = w_mat.astype(compute_dtype)

    nb = _pick_num_row_blocks(oh, ow, n)
    th = oh // nb

    kernel = functools.partial(_conv2d_relu_kernel,
                               kh=kh, kw=kw, ow=ow, cin=cin, th=th, stride=stride)

    # --- VMEM budget: only raise the scoped limit if the footprint needs it ---
    cd_bytes = jnp.dtype(compute_dtype).itemsize
    od_bytes = jnp.dtype(out_dtype).itemsize
    in_bytes = hp * wp * cin * cd_bytes
    w_bytes = kdim * c_store * cd_bytes
    b_bytes = c_store * 4
    out_bytes = th * ow * c_store * od_bytes
    work_bytes = th * ow * kdim * cd_bytes + th * ow * c_store * 4  # im2col + f32 acc
    est = 2 * (in_bytes + w_bytes + b_bytes + out_bytes) + work_bytes
    vmem_limit = None
    if est > (3 * (32 << 20)) // 4:
        try:
            cap = int(0.75 * pltpu.get_tpu_info().vmem_capacity_bytes)
        except Exception:
            cap = 48 << 20
        vmem_limit = min(max(2 * est, 32 << 20), cap)

    out_flat = pl.pallas_call(
        kernel,
        out_shape=jax.ShapeDtypeStruct((n, m, c_store), out_dtype),
        grid_spec=pltpu.PrefetchScalarGridSpec(
            num_scalar_prefetch=0,
            grid=(n, nb),                       # (image, output row-block)
            in_specs=[
                # constant block index across row blocks -> fetched once/image
                pl.BlockSpec((1, hp, wp, cin), lambda b, r: (b, 0, 0, 0)),
                pl.BlockSpec((kdim, c_store), lambda b, r: (0, 0)),
                pl.BlockSpec((1, c_store), lambda b, r: (0, 0)),
            ],
            out_specs=pl.BlockSpec((1, th * ow, c_store), lambda b, r: (b, r, 0)),
        ),
        compiler_params=pltpu.CompilerParams(
            dimension_semantics=("parallel", "parallel"),
            vmem_limit_bytes=vmem_limit,
        ),
    )(xp, w_mat, b_row)

    out = out_flat if c_store == cout else out_flat[:, :, :cout]
    out = out.reshape(n, oh, ow, cout)
    return jnp.transpose(out, (0, 3, 1, 2))     # back to NCHW (module interface)


def init_params(key, in_channels, out_channels, kernel_size):
    """Deterministic init matching nn.Conv2d default (uniform +/- 1/sqrt(fan_in))."""
    kw_, kb_ = jax.random.split(key)
    fan_in = in_channels * kernel_size * kernel_size
    bound = 1.0 / jnp.sqrt(jnp.float32(fan_in))
    weight = jax.random.uniform(
        kw_, (out_channels, in_channels, kernel_size, kernel_size),
        dtype=jnp.float32, minval=-bound, maxval=bound)
    bias = jax.random.uniform(
        kb_, (out_channels,), dtype=jnp.float32, minval=-bound, maxval=bound)
    return weight, bias


if __name__ == "__main__":
    key = jax.random.PRNGKey(0)
    k_x, k_p = jax.random.split(key)

    # Small shapes consistent with the module: N=2, Cin=4, H=W=16, Cout=8, k=3, stride=1
    N, CIN, H, W = 2, 4, 16, 16
    COUT, KS, STRIDE = 8, 3, 1

    x = jax.random.normal(k_x, (N, CIN, H, W), dtype=jnp.float32)
    weight, bias = init_params(k_p, CIN, COUT, KS)

    out = warmup_conv_forward(x, weight, bias, stride=STRIDE)
    out = jax.block_until_ready(out)
    assert out.shape == (N, COUT, H, W), out.shape

    def _ref(xr, wr):
        r = jax.lax.conv_general_dilated(
            xr, wr, window_strides=(STRIDE, STRIDE),
            padding=((KS // 2, KS // 2), (KS // 2, KS // 2)),
            dimension_numbers=("NCHW", "OIHW", "NCHW"),
            precision=jax.lax.Precision.HIGHEST)
        return jnp.maximum(r + bias[None, :, None, None], 0.0)

    # Tight check vs. a reference with the same bf16 operand quantization
    # (kernel streams bf16 operands, accumulates in f32).
    ref_q = _ref(x.astype(jnp.bfloat16).astype(jnp.float32),
                 weight.astype(jnp.bfloat16).astype(jnp.float32))
    err_q = float(jnp.max(jnp.abs(out - ref_q)))
    assert jnp.allclose(out, ref_q, atol=2e-3, rtol=2e-3), err_q

    # Loose check vs. the pure-f32 reference (bounds the bf16 streaming error).
    ref_f32 = _ref(x, weight)
    err_f = float(jnp.max(jnp.abs(out - ref_f32)))
    assert jnp.allclose(out, ref_f32, atol=5e-2, rtol=5e-2), err_f

    print("KERNEL_OK")
</pallas_src>

<mosaic_0001>
module attributes {stable_mosaic.version = 11 : i64} {
  func.func @_conv2d_relu_kernel(%arg0: i32, %arg1: i32, %arg2: memref<1x18x18x4xbf16, #tpu.memory_space<vmem>>, %arg3: memref<36x8xbf16, #tpu.memory_space<vmem>>, %arg4: memref<1x8xf32, #tpu.memory_space<vmem>>, %arg5: memref<1x128x8xf32, #tpu.memory_space<vmem>>) attributes {dimension_semantics = [#tpu.dimension_semantics<parallel>, #tpu.dimension_semantics<parallel>], iteration_bounds = array<i64: 2, 2>, scalar_prefetch = 0 : i64, scratch_operands = 0 : i64, tpu.core_type = #tpu.core_type<tc>, window_params = [{transform_indices = @transform_0, window_bounds = array<i64: 1, 18, 18, 4>}, {pipeline_mode = #tpu.pipeline_mode<synchronous>, transform_indices = @transform_1, window_bounds = array<i64: 36, 8>}, {pipeline_mode = #tpu.pipeline_mode<synchronous>, transform_indices = @transform_2, window_bounds = array<i64: 1, 8>}, {transform_indices = @transform_3, window_bounds = array<i64: 1, 128, 8>}]} {
    %c8_i32 = arith.constant 8 : i32
    %0 = arith.muli %arg1, %c8_i32 : i32
    %c0_i32 = arith.constant 0 : i32
    %1 = arith.addi %0, %c0_i32 : i32
    %c0 = arith.constant 0 : index
    %2 = arith.index_cast %1 : i32 to index
    %c0_0 = arith.constant 0 : index
    %c0_1 = arith.constant 0 : index
    %3 = vector.load %arg2[%c0, %2, %c0_0, %c0_1] : memref<1x18x18x4xbf16, #tpu.memory_space<vmem>>, vector<1x8x16x4xbf16>
    %4 = vector.shape_cast %3 : vector<1x8x16x4xbf16> to vector<8x16x4xbf16>
    %c0_i32_2 = arith.constant 0 : i32
    %5 = arith.addi %0, %c0_i32_2 : i32
    %c0_3 = arith.constant 0 : index
    %6 = arith.index_cast %5 : i32 to index
    %c1 = arith.constant 1 : index
    %c0_4 = arith.constant 0 : index
    %7 = vector.load %arg2[%c0_3, %6, %c1, %c0_4] : memref<1x18x18x4xbf16, #tpu.memory_space<vmem>>, vector<1x8x16x4xbf16>
    %8 = vector.shape_cast %7 : vector<1x8x16x4xbf16> to vector<8x16x4xbf16>
    %c0_i32_5 = arith.constant 0 : i32
    %9 = arith.addi %0, %c0_i32_5 : i32
    %c0_6 = arith.constant 0 : index
    %10 = arith.index_cast %9 : i32 to index
    %c2 = arith.constant 2 : index
    %c0_7 = arith.constant 0 : index
    %11 = vector.load %arg2[%c0_6, %10, %c2, %c0_7] : memref<1x18x18x4xbf16, #tpu.memory_space<vmem>>, vector<1x8x16x4xbf16>
    %12 = vector.shape_cast %11 : vector<1x8x16x4xbf16> to vector<8x16x4xbf16>
    %c1_i32 = arith.constant 1 : i32
    %13 = arith.addi %0, %c1_i32 : i32
    %c0_8 = arith.constant 0 : index
    %14 = arith.index_cast %13 : i32 to index
    %c0_9 = arith.constant 0 : index
    %c0_10 = arith.constant 0 : index
    %15 = vector.load %arg2[%c0_8, %14, %c0_9, %c0_10] : memref<1x18x18x4xbf16, #tpu.memory_space<vmem>>, vector<1x8x16x4xbf16>
    %16 = vector.shape_cast %15 : vector<1x8x16x4xbf16> to vector<8x16x4xbf16>
    %c1_i32_11 = arith.constant 1 : i32
    %17 = arith.addi %0, %c1_i32_11 : i32
    %c0_12 = arith.constant 0 : index
    %18 = arith.index_cast %17 : i32 to index
    %c1_13 = arith.constant 1 : index
    %c0_14 = arith.constant 0 : index
    %19 = vector.load %arg2[%c0_12, %18, %c1_13, %c0_14] : memref<1x18x18x4xbf16, #tpu.memory_space<vmem>>, vector<1x8x16x4xbf16>
    %20 = vector.shape_cast %19 : vector<1x8x16x4xbf16> to vector<8x16x4xbf16>
    %c1_i32_15 = arith.constant 1 : i32
    %21 = arith.addi %0, %c1_i32_15 : i32
    %c0_16 = arith.constant 0 : index
    %22 = arith.index_cast %21 : i32 to index
    %c2_17 = arith.constant 2 : index
    %c0_18 = arith.constant 0 : index
    %23 = vector.load %arg2[%c0_16, %22, %c2_17, %c0_18] : memref<1x18x18x4xbf16, #tpu.memory_space<vmem>>, vector<1x8x16x4xbf16>
    %24 = vector.shape_cast %23 : vector<1x8x16x4xbf16> to vector<8x16x4xbf16>
    %c2_i32 = arith.constant 2 : i32
    %25 = arith.addi %0, %c2_i32 : i32
    %c0_19 = arith.constant 0 : index
    %26 = arith.index_cast %25 : i32 to index
    %c0_20 = arith.constant 0 : index
    %c0_21 = arith.constant 0 : index
    %27 = vector.load %arg2[%c0_19, %26, %c0_20, %c0_21] : memref<1x18x18x4xbf16, #tpu.memory_space<vmem>>, vector<1x8x16x4xbf16>
    %28 = vector.shape_cast %27 : vector<1x8x16x4xbf16> to vector<8x16x4xbf16>
    %c2_i32_22 = arith.constant 2 : i32
    %29 = arith.addi %0, %c2_i32_22 : i32
    %c0_23 = arith.constant 0 : index
    %30 = arith.index_cast %29 : i32 to index
    %c1_24 = arith.constant 1 : index
    %c0_25 = arith.constant 0 : index
    %31 = vector.load %arg2[%c0_23, %30, %c1_24, %c0_25] : memref<1x18x18x4xbf16, #tpu.memory_space<vmem>>, vector<1x8x16x4xbf16>
    %32 = vector.shape_cast %31 : vector<1x8x16x4xbf16> to vector<8x16x4xbf16>
    %c2_i32_26 = arith.constant 2 : i32
    %33 = arith.addi %0, %c2_i32_26 : i32
    %c0_27 = arith.constant 0 : index
    %34 = arith.index_cast %33 : i32 to index
    %c2_28 = arith.constant 2 : index
    %c0_29 = arith.constant 0 : index
    %35 = vector.load %arg2[%c0_27, %34, %c2_28, %c0_29] : memref<1x18x18x4xbf16, #tpu.memory_space<vmem>>, vector<1x8x16x4xbf16>
    %36 = vector.shape_cast %35 : vector<1x8x16x4xbf16> to vector<8x16x4xbf16>
    %37 = tpu.concatenate %4, %8, %12, %16, %20, %24, %28, %32, %36 in 2 : vector<8x16x4xbf16>, vector<8x16x4xbf16>, vector<8x16x4xbf16>, vector<8x16x4xbf16>, vector<8x16x4xbf16>, vector<8x16x4xbf16>, vector<8x16x4xbf16>, vector<8x16x4xbf16>, vector<8x16x4xbf16> -> vector<8x16x36xbf16>
    %38 = vector.shape_cast %37 : vector<8x16x36xbf16> to vector<128x36xbf16>
    %c0_30 = arith.constant 0 : index
    %c0_31 = arith.constant 0 : index
    %39 = vector.load %arg3[%c0_30, %c0_31] : memref<36x8xbf16, #tpu.memory_space<vmem>>, vector<36x8xbf16>
    %cst = arith.constant dense<0.000000e+00> : vector<128x8xf32>
    %40 = tpu.matmul %38, %39, %cst {dimension_numbers = #tpu.dot_dimension_numbers<[1], [0], [0], [1], [0, 0, 1, 1], [], []>} : vector<128x36xbf16>, vector<36x8xbf16>, vector<128x8xf32> -> vector<128x8xf32>
    %c0_32 = arith.constant 0 : index
    %c0_33 = arith.constant 0 : index
    %41 = vector.load %arg4[%c0_32, %c0_33] : memref<1x8xf32, #tpu.memory_space<vmem>>, vector<1x8xf32>
    %42 = vector.broadcast %41 : vector<1x8xf32> to vector<128x8xf32>
    %43 = arith.addf %40, %42 : vector<128x8xf32>
    %cst_34 = arith.constant 0.000000e+00 : f32
    %44 = vector.broadcast %cst_34 : f32 to vector<128x8xf32>
    %45 = arith.maximumf %43, %44 : vector<128x8xf32>
    %c0_35 = arith.constant 0 : index
    %c0_36 = arith.constant 0 : index
    %c0_37 = arith.constant 0 : index
    %46 = vector.load %arg5[%c0_35, %c0_36, %c0_37] : memref<1x128x8xf32, #tpu.memory_space<vmem>>, vector<1x128x8xf32>
    %47 = vector.shape_cast %46 : vector<1x128x8xf32> to vector<128x8xf32>
    %48 = vector.shape_cast %45 : vector<128x8xf32> to vector<1x128x8xf32>
    tpu.vector_store %arg5[%c0_35, %c0_36, %c0_37], %48 {strides = array<i32>} : memref<1x128x8xf32, #tpu.memory_space<vmem>>, vector<1x128x8xf32>,
    return
  }
  func.func @transform_0(%arg0: i32, %arg1: i32) -> (i32, i32, i32, i32) {
    %c0_i32 = arith.constant 0 : i32
    %c0_i32_0 = arith.constant 0 : i32
    %c0_i32_1 = arith.constant 0 : i32
    %c0_i32_2 = arith.constant 0 : i32
    return %arg0, %c0_i32, %c0_i32_0, %c0_i32_1 : i32, i32, i32, i32
  }
  func.func @transform_1(%arg0: i32, %arg1: i32) -> (i32, i32) {
    %c0_i32 = arith.constant 0 : i32
    %c0_i32_0 = arith.constant 0 : i32
    %c0_i32_1 = arith.constant 0 : i32
    return %c0_i32, %c0_i32_0 : i32, i32
  }
  func.func @transform_2(%arg0: i32, %arg1: i32) -> (i32, i32) {
    %c0_i32 = arith.constant 0 : i32
    %c0_i32_0 = arith.constant 0 : i32
    %c0_i32_1 = arith.constant 0 : i32
    return %c0_i32, %c0_i32_0 : i32, i32
  }
  func.func @transform_3(%arg0: i32, %arg1: i32) -> (i32, i32, i32) {
    %c0_i32 = arith.constant 0 : i32
    %c0_i32_0 = arith.constant 0 : i32
    return %arg0, %arg1, %c0_i32 : i32, i32, i32
  }
}

</mosaic_0001>

<bundles_post_ra>
// kernel: warmup_conv_forward.1
= control target key start
LH: loop header
LB: loop body
LE: loop exit
PB: predicated region body
PF: predicated region fallthrough
CT: control target
= control target key end

     0   :  { %s1772_s12 = smov 0   ;;  %s1774_s13 = smov 0   ;;  %s2358_s0 = inlined_call_operand.vmem [shape: bf16[2,18,18,4], index: 0, kind: input, shape index: {}]   ;;  %s2359_s1 = inlined_call_operand.vmem [shape: bf16[36,8], index: 1, kind: input, shape index: {}]   ;;  %s2360_s2 = inlined_call_operand.vmem [shape: f32[1,8], index: 2, kind: input, shape index: {}]   ;;  %s2361_s3 = inlined_call_operand.vmem [shape: f32[2,256,8], index: 3, kind: output, shape index: {}]  }
   0x1   :  { %s1776_s14 = smov 0   ;;  %s1778_s15 = smov 0  }
   0x2   :  { %s1780_s16 = smov 0  }
   0x3 LB: > { %s22_s17 = sadd.s32 1, %s1734_s14  ;;  %s25_s18 = sadd.s32 1, %s1738_s15  ;;  %s1742_s16 = sphi %s1780_s16, %s13_s16   ;;  %s1738_s15 = sphi %s1778_s15, %s2365_s15   ;;  %s1734_s14 = sphi %s1776_s14, %s2364_s14   ;;  %s1730_s13 = sphi %s1774_s13, %s2363_s13   ;;  %s1726_s12 = sphi %s1772_s12, %s2362_s12  }
   0x4   : > { %p23_p0 = scmp.ge.s32.totalorder %s22_s17, 2  ;;  %p1417_p1 = scmp.ge.s32.totalorder %s1742_s16, 1 }
   0x5   : > { %p151_p2 = scmp.lt.s32.totalorder %s1742_s16, 5 }
   0x6   : > { %s2367_s17 = smov (%p23_p0, %s22_s17), 0  ;;  %s2369_s18 = smov (!%p23_p0, %s25_s18), %s1738_s15 }
   0x7   : > { %p152_p3 = pnand %p1417_p1, %p151_p2  ;;  %p27_p4 = scmp.ge.s32.totalorder %s2369_s18, 2 }
   0x8   : > { %p179_p5 = scmp.lt.s32.totalorder (!%p152_p3), %s1730_s13, 1  ;;  %s1511_s19 = smul.u32 (!%p152_p3), 96, %s1726_s12 }
   0x9   : > { %s2371_s18 = smov (%p27_p4, %s2369_s18), 0  ;;  %155 = sbr.rel (%p152_p3) target bundleno = 452 (0x1c4), region = 32 }
   0xa   : > { %s1744_s25 = smov (!%p152_p3), 8   ;;  %s1745_s26 = smov (!%p152_p3), 4  }
   0xb   : > { %s1746_s27 = smov (!%p152_p3), 12   ;;  %s1747_s28 = smov (!%p152_p3), 16  }
   0xc   : > { %s1748_s29 = smov (!%p152_p3), 20   ;;  %s1749_s30 = smov (!%p152_p3), 24  }
   0xd   : > { %s1750_s4 = smov (!%p152_p3), 28   ;;  %s1751_s5 = smov (!%p152_p3), 32  }
   0xe   : > { %s2373_s13 = smov (!%p179_p5, %s1730_s13), 1  ;;  %vm504_vm0 = vcmask 1046528   ;;  %vm367_vm1 = vsmask.f32 7424  ;;  %vm1234_vm2 = vcmask 1041408   ;;  %vm1057_vm3 = vcmask 31744  }
   0xf   : > { %s1618_s20 = smul.u32 216, %s2373_s13  ;;  %vm1074_vm4 = vcmask 64512   ;;  %vm1091_vm5 = vcmask 97280   ;;  %vm1108_vm6 = vcmask 130048   ;;  %vm1125_vm7 = vcmask 162816  }
  0x10   : > { %vm1142_vm8 = vcmask 195584   ;;  %vm1176_vm9 = vcmask 261120   ;;  %vm1159_vm10 = vcmask 228352   ;;  %vm1217_vm11 = vcmask 293888  }
  0x11   : > { %s183_s23 = scalar_lea.vmem %s2358_s0, %s1618_s20  ;;  %s1420_s20 = sshll.u32 %s2373_s13, 5 }
  0x12   : > { %s1811_s24 = scalar_lea.vmem %s183_s23, %s1511_s19  ;;  %s1419_s19 = sshll.u32 %s1726_s12, 4 }
  0x13   : > { %v1579_v0 = vld [vmem:[%s1811_s24 + $0x30] sm:$0xf0]  ;;  %v219_v1 = vld [vmem:[%s1811_s24 + $0x38] sm:$0x1]  ;;  %v1580_v2 = vld [vmem:[%s1811_s24 + $0x30] sm:$0xe] }
  0x14   : > { %v355_v3 = vunpack.c.l.b16 %v219_v1  ;;  %v1581_v4 = vor.u32 %v1580_v2, %v1579_v0  ;;  %v1817_v5 = vld [vmem:[%s1811_s24 + $0x30] sm:$0xff]   ;;  %v1582_v6 = vld [vmem:[%s1811_s24 + $0x48] sm:$0xf0]  ;;  %v1583_v10 = vld [vmem:[%s1811_s24 + $0x48] sm:$0xe]  ;;  %p187_p6 = scmp.lt.s32.totalorder %s1419_s19, 31 }
  0x15   : > { %v221_v7 = vld [vmem:[%s1811_s24 + $0x50] sm:$0x1]  ;;  %v417_v8 = vshrl.u32 %v1817_v5, 16  ;;  %v419_v9 = vshll.u32 %v1817_v5, 16  ;;  %v1825_v12 = vld [vmem:[%s1811_s24 + $0x48] sm:$0xff]   ;;  %v1439_v13 = vld [vmem:[%s1811_s24 + $0x54] sm:$0xff]   ;;  %v1584_v17 = vor.u32 %v1583_v10, %v1582_v6 }
  0x16   : > { %v357_v11 = vunpack.c.l.b16 %v221_v7  ;;  %v1829_v14 = vld [vmem:[%s1811_s24 + $0x54] sm:$0xf0]  ;;  %v363_v15 = vpack.c.b16 %v355_v3, %v355_v3  ;;  %v517_v16 = vrot.slane %v1581_v4, 1  ;;  %v443_v20 = vshll.u32 %v1825_v12, 16  ;;  %v1449_v21 = vld [vmem:[%s1811_s24 + $0x5c] sm:$0x1] }
  0x17   : > { %v421_v18 = vrot.slane %v419_v9, 1  ;;  %v1435_v24 = vld [vmem:[%s1811_s24 + $0x3c] sm:$0xff]   ;;  %v441_v27 = vshrl.u32 %v1825_v12, 16  ;;  %v615_v32 = vunpack.c.l.b16 %v1449_v21  ;;  %v1447_v33 = vld [vmem:[%s1811_s24 + $0x44] sm:$0x1]  ;;  %v523_v34 = vrot.slane %v1584_v17, 1 }
  0x18   : > { %v365_v19 = vpack.c.b16 %v357_v11, %v357_v11  ;;  %v518_v22 = vrot.slane %v363_v15, 1  ;;  %v424_v23 = vshll.u32 %v363_v15, 16  ;;  %v1668_v25 = vld [vmem:[%s1811_s24 + $0x3c] sm:$0xf0]  ;;  %v445_v28 = vrot.slane %v443_v20, 1  ;;  %593 = vrot.lane.b32.xlu2 %v1435_v24, %s1746_s27  ;;  %v1860_v0 = vld [vmem:[%s1811_s24 + $0x18] sm:$0xff]  }
  0x19   : > { %v1835_v26 = vor.u32 %v421_v18, %v417_v8  ;;  %v623_v37 = vpack.c.b16 %v615_v32, %v615_v32  ;;  %v700_v38 = vshll.u32 %v1439_v13, 16  ;;  %v613_v39 = vunpack.c.l.b16 %v1447_v33  ;;  %v1669_v43 = vld [vmem:[%s1811_s24 + $0x3c] sm:$0xe]  ;;  %v1672_v52 = vld [vmem:[%s1811_s24 + $0x54] sm:$0xe]  ;;  %v1865_v6 = vld [vmem:[%s1811_s24] sm:$0xff]  }
  0x1a   : > { %v448_v29 = vshll.u32 %v365_v19, 16  ;;  %v519_v30 = vsel %vm504_vm0, %v517_v16, %v518_v22  ;;  %v426_v31 = vrot.slane %v424_v23, 1  ;;  %v524_v36 = vrot.slane %v365_v19, 1  ;;  %v217_v56 = vld [vmem:[%s1811_s24 + $0x20] sm:$0x1]  ;;  %s2375_s19 = smov (!%p187_p6, %s1419_s19), 31 }
  0x1b   : > { %537 = vrot.lane.b32.xlu1 %v519_v30, %s1744_s25  ;;  %v1844_v40 = vor.u32 %v445_v28, %v441_v27  ;;  %v621_v42 = vpack.c.b16 %v613_v39, %v613_v39  ;;  %v698_v45 = vshrl.u32 %v1439_v13, 16  ;;  %v702_v46 = vrot.slane %v700_v38, 1  ;;  %v215_v60 = vld [vmem:[%s1811_s24 + $0x8] sm:$0x1]  ;;  %v1481_v7 = vld [vmem:[%s1811_s24 + $0x50] sm:$0x1]  ;;  %s190_s21 = sadd.s32 %s1420_s20, %s2375_s19 }
  0x1c   : > { %v427_v35 = vsel %vm367_vm1, %v1835_v26, %v426_v31  ;;  %v450_v41 = vrot.slane %v448_v29, 1  ;;  %v525_v44 = vsel %vm504_vm0, %v523_v34, %v524_v36  ;;  %v705_v47 = vshll.u32 %v623_v37, 16  ;;  %v1483_v17 = vld [vmem:[%s1811_s24 + $0x68] sm:$0x1]  ;;  %v1573_v31 = vld [vmem:[%s1811_s24] sm:$0xf0] }
  0x1d   : > { %472 = vrot.lane.b32.xlu0 %v427_v35, %s1745_s26  ;;  %v676_v48 = vshll.u32 %v1435_v24, 16  ;;  %v674_v50 = vshrl.u32 %v1435_v24, 16  ;;  %v681_v51 = vshll.u32 %v621_v42, 16  ;;  %v703_v54 = vor.u32 %v702_v46, %v698_v45  ;;  %v1574_v32 = vld [vmem:[%s1811_s24] sm:$0xe]  ;;  %s1421_s12 = sshll.u32 %s190_s21, 3 }
  0x1e   : > { %v451_v49 = vsel %vm367_vm1, %v1844_v40, %v450_v41  ;;  %v707_v55 = vrot.slane %v705_v47, 1  ;;  %v1670_v59 = vor.u32 %v1669_v43, %v1668_v25  ;;  %v353_v62 = vunpack.c.l.b16 %v217_v56  ;;  %v1881_v25 = vld [vmem:[%s1811_s24 + $0x60] sm:$0xff]   ;;  %v1903_v43 = vld [vmem:[%s1811_s24 + $0xc] sm:$0xf0] }
  0x1f   : > { %v678_v53 = vrot.slane %v676_v48, 1  ;;  %v683_v58 = vrot.slane %v681_v51, 1  ;;  %v1673_v63 = vor.u32 %v1672_v52, %v1829_v14  ;;  %v774_v3 = vrot.slane %v621_v42, 1  ;;  %v1900_v42 = vld [vmem:[%s1811_s24 + $0xc] sm:$0xff]   ;;  %v1576_v48 = vld [vmem:[%s1811_s24 + $0x18] sm:$0xf0] }
  0x20   : > { %v708_v61 = vsel %vm367_vm1, %v703_v54, %v707_v55  ;;  %597 = vrot.lane.b32.xlu2 %v1439_v13, %s1746_s27  ;;  %v773_v2 = vrot.slane %v1670_v59, 1  ;;  %v351_v4 = vunpack.c.l.b16 %v215_v60  ;;  %v1868_v8 = vpack.c.b16 %v353_v62, %v353_v62  ;;  %v1606_v52 = vld [vmem:[%s1811_s24 + $0x60] sm:$0xf0]  ;;  %v1443_v54 = vld [vmem:[%s1811_s24 + $0x14] sm:$0x1] }
  0x21   : > { %v679_v57 = vor.u32 %v678_v53, %v674_v50  ;;  %v395_v9 = vshll.u32 %v1860_v0, 16  ;;  %v779_v10 = vrot.slane %v1673_v63, 1  ;;  %v780_v11 = vrot.slane %v623_v37, 1  ;;  %v1607_v53 = vld [vmem:[%s1811_s24 + $0x60] sm:$0xe] }
  0x22   : > { %v775_v13 = vsel %vm504_vm0, %v773_v2, %v774_v3  ;;  %v359_v14 = vpack.c.b16 %v351_v4, %v351_v4  ;;  %v371_v15 = vshll.u32 %v1865_v6, 16  ;;  %v869_v16 = vunpack.c.l.b16 %v1481_v7  ;;  %v1603_v60 = vld [vmem:[%s1811_s24 + $0x48] sm:$0xf0]  ;;  %v1674_v2 = vld [vmem:[%s1811_s24 + $0x24] sm:$0xf0] }
  0x23   : > { %541 = vrot.lane.b32.xlu1 %v525_v44, %s1744_s25  ;;  %v684_v1 = vsel %vm367_vm1, %v679_v57, %v683_v58  ;;  %v393_v18 = vshrl.u32 %v1860_v0, 16  ;;  %v397_v19 = vrot.slane %v395_v9, 1  ;;  %v400_v20 = vshll.u32 %v1868_v8, 16 }
  0x24   : > { %v781_v21 = vsel %vm504_vm0, %v779_v10, %v780_v11  ;;  %v369_v22 = vshrl.u32 %v1865_v6, 16  ;;  %v373_v23 = vrot.slane %v371_v15, 1  ;;  %v376_v24 = vshll.u32 %v359_v14, 16  ;;  %v1445_v15 = vld [vmem:[%s1811_s24 + $0x2c] sm:$0x1] }
  0x25   : > { %476 = vrot.lane.b32.xlu0 %v451_v49, %s1745_s26  ;;  %v871_v27 = vunpack.c.l.b16 %v1483_v17  ;;  %v1883_v28 = vpack.c.b16 %v869_v16, %v869_v16  ;;  %v1887_v29 = vor.u32 %v397_v19, %v393_v18  ;;  %v402_v30 = vrot.slane %v400_v20, 1  ;;  %v1577_v49 = vld [vmem:[%s1811_s24 + $0x18] sm:$0xe] }
  0x26   : > { %v956_v33 = vshll.u32 %v1881_v25, 16  ;;  %v374_v34 = vor.u32 %v373_v23, %v369_v22  ;;  %v378_v35 = vrot.slane %v376_v24, 1  ;;  %v1575_v39 = vor.u32 %v1574_v32, %v1573_v31  ;;  %v1675_v23 = vld [vmem:[%s1811_s24 + $0x24] sm:$0xe] }
  0x27   : > { %v879_v36 = vpack.c.b16 %v871_v27, %v871_v27  ;;  %v937_v37 = vshll.u32 %v1883_v28, 16  ;;  %v403_v38 = vsel %vm367_vm1, %v1887_v29, %v402_v30  ;;  %v954_v41 = vshrl.u32 %v1881_v25, 16 }
  0x28   : > { %793 = vrot.lane.b32.xlu2 %v775_v13, %s1748_s29  ;;  %v379_v44 = vsel %vm367_vm1, %v374_v34, %v378_v35  ;;  %v958_v45 = vrot.slane %v956_v33, 1  ;;  %v505_v50 = vrot.slane %v1575_v39, 1  ;;  %v506_v51 = vrot.slane %v359_v14, 1  ;;  %v1477_v33 = vld [vmem:[%s1811_s24 + $0x20] sm:$0x1] }
  0x29   : > { %v961_v46 = vshll.u32 %v879_v36, 16  ;;  %v939_v47 = vrot.slane %v937_v37, 1  ;;  %v1578_v58 = vor.u32 %v1577_v49, %v1576_v48  ;;  %v1608_v59 = vor.u32 %v1607_v53, %v1606_v52  ;;  %v1479_v49 = vld [vmem:[%s1811_s24 + $0x38] sm:$0x1] }
  0x2a   : > { %v1913_v55 = vor.u32 %v958_v45, %v954_v41  ;;  %v507_v62 = vsel %vm504_vm0, %v505_v50, %v506_v51  ;;  %v609_v63 = vunpack.c.l.b16 %v1443_v54  ;;  %v512_v9 = vrot.slane %v1868_v8, 1  ;;  %v1952_v54 = vld [vmem:[%s1811_s24 + $0x3c] sm:$0xff]  }
  0x2b   : > { %733 = vrot.lane.b32.xlu1 %v708_v61, %s1747_s28  ;;  %v963_v56 = vrot.slane %v961_v46, 1  ;;  %v940_v57 = vsel %vm367_vm1, %v1844_v40, %v939_v47  ;;  %v1604_v61 = vld [vmem:[%s1811_s24 + $0x48] sm:$0xe]  ;;  %v511_v7 = vrot.slane %v1578_v58, 1  ;;  %v1035_v10 = vrot.slane %v1608_v59, 1  ;;  %v1957_v58 = vld [vmem:[%s1811_s24 + $0x54] sm:$0xff]  }
  0x2c   : > { %v1605_v4 = vor.u32 %v1604_v61, %v1603_v60  ;;  %v1036_v11 = vrot.slane %v879_v36, 1  ;;  %v617_v13 = vpack.c.b16 %v609_v63, %v609_v63  ;;  %v628_v14 = vshll.u32 %v1900_v42, 16  ;;  %v1683_v59 = vld [vmem:[%s1811_s24 + $0x54] sm:$0xf0]  ;;  %v1600_v61 = vld [vmem:[%s1811_s24 + $0x30] sm:$0xf0] }
  0x2d   : > { %729 = vrot.lane.b32.xlu0 %v684_v1, %s1747_s28  ;;  %v1431_v1 = vld [vmem:[%s1811_s24 + $0x24] sm:$0xff]   ;;  %v964_v3 = vsel %vm367_vm1, %v1913_v55, %v963_v56  ;;  %v1030_v17 = vrot.slane %v1883_v28, 1  ;;  %v513_v18 = vsel %vm504_vm0, %v511_v7, %v512_v9  ;;  %v626_v8 = vshrl.u32 %v1900_v42, 16  ;;  %v1678_v28 = vld [vmem:[%s1811_s24 + $0xc] sm:$0xe] }
  0x2e   : > { %v1029_v16 = vrot.slane %v1605_v4, 1  ;;  %v1037_v19 = vsel %vm504_vm0, %v1035_v10, %v1036_v11  ;;  %v630_v20 = vrot.slane %v628_v14, 1  ;;  %v611_v22 = vunpack.c.l.b16 %v1445_v15  ;;  %v1680_v56 = vld [vmem:[%s1811_s24 + $0x3c] sm:$0xf0]  ;;  %v1601_v63 = vld [vmem:[%s1811_s24 + $0x30] sm:$0xe] }
  0x2f   : > { %v652_v27 = vshll.u32 %v1431_v1, 16  ;;  %v650_v34 = vshrl.u32 %v1431_v1, 16  ;;  %v865_v39 = vunpack.c.l.b16 %v1477_v33  ;;  %v1679_v41 = vor.u32 %v1678_v28, %v1903_v43  ;;  %v222_v7 = vld [vmem:[%s1811_s24 + $0x5c] sm:$0x1]  ;;  %v1681_v14 = vld [vmem:[%s1811_s24 + $0x3c] sm:$0xe] }
  0x30   : > { %853 = vrot.lane.b32.xlu2 %v1881_v25, %s1749_s30  ;;  %v1031_v24 = vsel %vm504_vm0, %v1029_v16, %v1030_v17  ;;  %v631_v30 = vor.u32 %v630_v20, %v626_v8  ;;  %v619_v32 = vpack.c.b16 %v611_v22, %v611_v22  ;;  %v762_v51 = vrot.slane %v617_v13, 1 }
  0x31   : > { %v654_v35 = vrot.slane %v652_v27, 1  ;;  %v873_v48 = vpack.c.b16 %v865_v39, %v865_v39  ;;  %v761_v50 = vrot.slane %v1679_v41, 1  ;;  %v867_v53 = vunpack.c.l.b16 %v1479_v49 }
  0x32   : > { %v657_v36 = vshll.u32 %v619_v32, 16  ;;  %v768_v47 = vrot.slane %v619_v32, 1  ;;  %v1602_v10 = vor.u32 %v1601_v63, %v1600_v61  ;;  %v358_v15 = vunpack.c.l.b16 %v222_v7  ;;  %v1471_v7 = vld [vmem:[%s1811_s24 + $0x54] sm:$0xff]  }
  0x33   : > { %849 = vrot.lane.b32.xlu1 %v1825_v12, %s1749_s30  ;;  %v889_v52 = vshll.u32 %v873_v48, 16  ;;  %v431_v17 = vshll.u32 %v1952_v54, 16  ;;  %v429_v27 = vshrl.u32 %v1952_v54, 16  ;;  %v1682_v33 = vor.u32 %v1681_v14, %v1680_v56  ;;  %v2013_v14 = vld [vmem:[%s1811_s24 + $0x24] sm:$0xff]  }
  0x34   : > { %v659_v45 = vrot.slane %v657_v36, 1  ;;  %v366_v22 = vpack.c.b16 %v358_v15, %v358_v15  ;;  %v2016_v15 = vld [vmem:[%s1811_s24 + $0x24] sm:$0xf0] }
  0x35   : > { %797 = vrot.lane.b32.xlu0 %v781_v21, %s1748_s29  ;;  %v633_v21 = vshll.u32 %v617_v13, 16  ;;  %v891_v60 = vrot.slane %v889_v52, 1  ;;  %v433_v28 = vrot.slane %v431_v17, 1  ;;  %v520_v41 = vrot.slane %v1682_v33, 1  ;;  %v216_v17 = vld [vmem:[%s1811_s24 + $0x14] sm:$0x1] }
  0x36   : > { %v527_v56 = vrot.slane %v366_v22, 1 }
  0x37   : > { %v635_v31 = vrot.slane %v633_v21, 1  ;;  %v892_v9 = vsel %vm367_vm1, %v1887_v29, %v891_v60  ;;  %v1018_v21 = vrot.slane %v873_v48, 1  ;;  %v1592_v60 = vld [vmem:[%s1811_s24 + $0x48] sm:$0xe] }
  0x38   : > { %985 = vrot.lane.b32.xlu2 %v940_v57, %s1750_s4  ;;  %v763_v57 = vsel %vm504_vm0, %v761_v50, %v762_v51  ;;  %v1450_v50 = vld [vmem:[%s1811_s24 + $0x68] sm:$0x1] }
  0x39   : > { %v636_v37 = vsel %vm367_vm1, %v631_v30, %v635_v31  ;;  %v1684_v31 = vld [vmem:[%s1811_s24 + $0x54] sm:$0xe] }
  0x3a   : > { %v1685_v49 = vor.u32 %v1684_v31, %v1683_v59  ;;  %v1591_v59 = vld [vmem:[%s1811_s24 + $0x48] sm:$0xf0] }
  0x3b   : > { %468 = vrot.lane.b32.xlu1 %v403_v38, %s1745_s26  ;;  %v1676_v38 = vor.u32 %v1675_v23, %v1674_v2  ;;  %v220_v2 = vld [vmem:[%s1811_s24 + $0x44] sm:$0x1]  ;;  %v455_v23 = vshll.u32 %v1957_v58, 16 }
  0x3c   : > { %v356_v11 = vunpack.c.l.b16 %v220_v2  ;;  %v2003_v2 = vld [vmem:[%s1811_s24 + $0xc] sm:$0xf0] }
  0x3d   : > { %464 = vrot.lane.b32.xlu0 %v379_v44, %s1745_s26  ;;  %v655_v44 = vor.u32 %v654_v35, %v650_v34  ;;  %v767_v46 = vrot.slane %v1676_v38, 1  ;;  %v453_v35 = vshrl.u32 %v1957_v58, 16  ;;  %v457_v36 = vrot.slane %v455_v23, 1  ;;  %v218_v23 = vld [vmem:[%s1811_s24 + $0x2c] sm:$0x1] }
  0x3e   : > { %v364_v8 = vpack.c.b16 %v356_v11, %v356_v11  ;;  %v434_v38 = vor.u32 %v433_v28, %v429_v27  ;;  %v1594_v11 = vld [vmem:[%s1811_s24 + $0x60] sm:$0xf0]  ;;  %v2032_v28 = vld [vmem:[%s1811_s24 + $0x6c] sm:$0xf0]  ;;  %v354_v33 = vunpack.c.l.b16 %v218_v23 }
  0x3f   : > { %v769_v43 = vsel %vm504_vm0, %v767_v46, %v768_v47  ;;  %v458_v46 = vor.u32 %v457_v36, %v453_v35 }
  0x40   : > { %533 = vrot.lane.b32.xlu2 %v513_v18, %s1744_s25  ;;  %v1023_v18 = vrot.slane %v1602_v10, 1  ;;  %v436_v30 = vshll.u32 %v364_v8, 16 }
  0x42   : > { %v438_v39 = vrot.slane %v436_v30, 1 }
  0x43   : > { %529 = vrot.lane.b32.xlu1 %v507_v62, %s1744_s25  ;;  %v875_v62 = vpack.c.b16 %v867_v53, %v867_v53  ;;  %v526_v53 = vrot.slane %v1685_v49, 1  ;;  %v942_v49 = vshrl.u32 %v1471_v7, 16 }
  0x44   : > { %v439_v48 = vsel %vm367_vm1, %v434_v38, %v438_v39  ;;  %v944_v38 = vshll.u32 %v1471_v7, 16 }
  0x45   : > { %989 = vrot.lane.b32.xlu0 %v964_v3, %s1750_s4  ;;  %v1598_v3 = vld [vmem:[%s1811_s24 + $0x18] sm:$0xe]  ;;  %v913_v4 = vshll.u32 %v875_v62, 16 }
  0x47   : > { %v915_v16 = vrot.slane %v913_v4, 1 }
  0x48   : > { %585 = vrot.lane.b32.xlu2 %v1900_v42, %s1746_s27  ;;  %v660_v42 = vsel %vm367_vm1, %v655_v44, %v659_v45  ;;  %v521_v44 = vrot.slane %v364_v8, 1  ;;  %v1448_v45 = vld [vmem:[%s1811_s24 + $0x50] sm:$0x1]  ;;  %v1482_v8 = vld [vmem:[%s1811_s24 + $0x5c] sm:$0x1] }
  0x49   : > { %v870_v30 = vunpack.c.l.b16 %v1482_v8  ;;  %v1197_v8 = vld [vmem:[%s2359_s1 + $0x10] sm:$0x3] }
  0x4a   : > { %v522_v51 = vsel %vm504_vm0, %v520_v41, %v521_v44  ;;  %v2048_v44 = vpack.c.b16 %v354_v33, %v354_v33  ;;  %v1696_v33 = vld [vmem:[%s1811_s24 + $0x6c] sm:$0xe] }
  0x4b   : > { %1053 = vrot.lane.b32.xlu1 %v1037_v19, %s1751_s5  ;;  %v1024_v19 = vrot.slane %v875_v62, 1  ;;  %v528_v62 = vsel %vm504_vm0, %v526_v53, %v527_v56  ;;  %v2044_v39 = vpack.c.b16 %v870_v30, %v870_v30  ;;  %v1687_v53 = vld [vmem:[%s1811_s24 + $0x24] sm:$0xe] }
  0x4c   : > { %v1688_v23 = vor.u32 %v1687_v53, %v2016_v15  ;;  %v515_v15 = vrot.slane %v2048_v44, 1 }
  0x4d   : > { %1049 = vrot.lane.b32.xlu0 %v1031_v24, %s1751_s5  ;;  %v916_v24 = vsel %vm367_vm1, %v1835_v26, %v915_v16  ;;  %v1025_v32 = vsel %vm504_vm0, %v1023_v18, %v1024_v19 }
  0x50   : > { %725 = vrot.lane.b32.xlu2 %v660_v42, %s1747_s28  ;;  %v614_v42 = vunpack.c.l.b16 %v1448_v45 }
  0x53   : > { %721 = vrot.lane.b32.xlu1 %v636_v37, %s1747_s28  ;;  %v460_v37 = vshll.u32 %v366_v22, 16 }
  0x55   : > { %589 = vrot.lane.b32.xlu0 %v1431_v1, %s1746_s27  ;;  %v1597_v1 = vld [vmem:[%s1811_s24 + $0x18] sm:$0xf0]  ;;  %v462_v47 = vrot.slane %v460_v37, 1  ;;  %v1484_v37 = vld [vmem:[%s1811_s24 + $0x74] sm:$0x1] }
  0x56   : > { %v1599_v13 = vor.u32 %v1598_v3, %v1597_v1  ;;  %v2000_v1 = vld [vmem:[%s1811_s24 + $0xc] sm:$0xff]   ;;  %v1593_v3 = vor.u32 %v1592_v60, %v1591_v59 }
  0x57   : > { %v463_v52 = vsel %vm367_vm1, %v458_v46, %v462_v47  ;;  %v381_v45 = vshrl.u32 %v2000_v1, 16  ;;  %v1690_v60 = vld [vmem:[%s1811_s24 + $0xc] sm:$0xe] }
  0x58   : > { %841 = vrot.lane.b32.xlu2 %v1860_v0, %s1749_s30  ;;  %v1017_v20 = vrot.slane %v1599_v13, 1  ;;  %v1595_v13 = vld [vmem:[%s1811_s24 + $0x60] sm:$0xe]  ;;  %v776_v18 = vrot.slane %v1593_v3, 1 }
  0x5a   : > { %v1019_v34 = vsel %vm504_vm0, %v1017_v20, %v1018_v21  ;;  %v1596_v20 = vor.u32 %v1595_v13, %v1594_v11 }
  0x5b   : > { %789 = vrot.lane.b32.xlu1 %v769_v43, %s1748_s29  ;;  %v616_v43 = vunpack.c.l.b16 %v1450_v50  ;;  %v946_v50 = vrot.slane %v944_v38, 1 }
  0x5c   : > { %v782_v31 = vrot.slane %v1596_v20, 1 }
  0x5d   : > { %785 = vrot.lane.b32.xlu0 %v763_v57, %s1748_s29  ;;  %v622_v57 = vpack.c.b16 %v614_v42, %v614_v42  ;;  %v624_v61 = vpack.c.b16 %v616_v43, %v616_v43  ;;  %v405_v42 = vshrl.u32 %v2013_v14, 16 }
  0x5f   : > { %v693_v63 = vshll.u32 %v622_v57, 16  ;;  %v717_v4 = vshll.u32 %v624_v61, 16  ;;  %v777_v19 = vrot.slane %v622_v57, 1 }
  0x60   : > { %981 = vrot.lane.b32.xlu2 %v916_v24, %s1750_s4  ;;  %v352_v24 = vunpack.c.l.b16 %v216_v17 }
  0x61   : > { %v695_v10 = vrot.slane %v693_v63, 1  ;;  %v719_v21 = vrot.slane %v717_v4, 1  ;;  %v778_v27 = vsel %vm504_vm0, %v776_v18, %v777_v19  ;;  %v947_v63 = vor.u32 %v946_v50, %v942_v49 }
  0x62   : > { %v2037_v35 = vpack.c.b16 %v352_v24, %v352_v24 }
  0x63   : > { %977 = vrot.lane.b32.xlu1 %v892_v9, %s1750_s4  ;;  %v2008_v9 = vld [vmem:[%s1811_s24 + $0x54] sm:$0xf0]  ;;  %v696_v22 = vsel %vm367_vm1, %v1844_v40, %v695_v10  ;;  %v383_v40 = vshll.u32 %v2000_v1, 16 }
  0x64   : > { %v388_v47 = vshll.u32 %v2037_v35, 16 }
  0x65   : > { %845 = vrot.lane.b32.xlu0 %v1817_v5, %s1749_s30  ;;  %v385_v46 = vrot.slane %v383_v40, 1  ;;  %v514_v40 = vrot.slane %v1688_v23, 1 }
  0x66   : > { %v390_v59 = vrot.slane %v388_v47, 1 }
  0x67   : > { %v386_v57 = vor.u32 %v385_v46, %v381_v45  ;;  %v1513_v46 = vld [vmem:[%s2359_s1 + $0x8] sm:$0xff]  ;;  %v516_v49 = vsel %vm504_vm0, %v514_v40, %v515_v15 }
  0x68   : > { %474 = vrot.lane.b32.xlu2 %v439_v48, %s1745_s26  ;;  %v872_v48 = vunpack.c.l.b16 %v1484_v37  ;;  %v1446_v37 = vld [vmem:[%s1811_s24 + $0x38] sm:$0x1] }
  0x69   : > { %v391_v13 = vsel %vm367_vm1, %v386_v57, %v390_v59  ;;  %v612_v47 = vunpack.c.l.b16 %v1446_v37 }
  0x6b   : > { %1045 = vrot.lane.b32.xlu1 %v1025_v32, %s1751_s5  ;;  %v783_v32 = vrot.slane %v624_v61, 1  ;;  %v2059_v61 = vpack.c.b16 %v872_v48, %v872_v48  ;;  %v1444_v48 = vld [vmem:[%s1811_s24 + $0x20] sm:$0x1]  ;;  %v2109_v53 = vpack.c.b16 %v612_v47, %v612_v47 }
  0x6d   : > { %1041 = vrot.lane.b32.xlu0 %v1019_v34, %s1751_s5  ;;  %v720_v34 = vsel %vm367_vm1, %v1913_v55, %v719_v21  ;;  %v784_v41 = vsel %vm504_vm0, %v782_v31, %v783_v32  ;;  %v407_v55 = vshll.u32 %v2013_v14, 16  ;;  %v973_v19 = vshll.u32 %v2059_v61, 16  ;;  %v1693_v21 = vld [vmem:[%s1811_s24 + $0x54] sm:$0xe] }
  0x6e   : > { %v1694_v45 = vor.u32 %v1693_v21, %v2008_v9  ;;  %v1697_v9 = vor.u32 %v1696_v33, %v2032_v28  ;;  %v1463_v21 = vld [vmem:[%s1811_s24 + $0x24] sm:$0xff]   ;;  %v1478_v33 = vld [vmem:[%s1811_s24 + $0x2c] sm:$0x1] }
  0x6f   : > { %v409_v43 = vrot.slane %v407_v55, 1  ;;  %v975_v31 = vrot.slane %v973_v19, 1  ;;  %v1586_v19 = vld [vmem:[%s1811_s24 + $0x18] sm:$0xe]  ;;  %v866_v37 = vunpack.c.l.b16 %v1478_v33 }
  0x70   : > { %543 = vrot.lane.b32.xlu2 %v528_v62, %s1744_s25  ;;  %v1032_v50 = vrot.slane %v1694_v45, 1 }
  0x71   : > { %v410_v10 = vor.u32 %v409_v43, %v405_v42  ;;  %v610_v42 = vunpack.c.l.b16 %v1444_v48  ;;  %v1512_v43 = vld [vmem:[%s2359_s1] sm:$0xff]  ;;  %v771_v48 = vrot.slane %v2109_v53, 1 }
  0x72   : > { %v2020_v16 = vpop.permute.xlu2 %593 }
  0x73   : > { %539 = vrot.lane.b32.xlu1 %v522_v51, %s1744_s25  ;;  %v949_v51 = vshll.u32 %v2044_v39, 16  ;;  %v618_v59 = vpack.c.b16 %v610_v42, %v610_v42 }
  0x75   : > { %478 = vrot.lane.b32.xlu0 %v463_v52, %s1745_s26  ;;  %v412_v52 = vshll.u32 %v2048_v44, 16  ;;  %v951_v3 = vrot.slane %v949_v51, 1  ;;  %v1033_v51 = vrot.slane %v2044_v39, 1  ;;  %v1038_v39 = vrot.slane %v1697_v9, 1 }
  0x77   : > { %v414_v11 = vrot.slane %v412_v52, 1  ;;  %v1034_v57 = vsel %vm504_vm0, %v1032_v50, %v1033_v51  ;;  %v1699_v50 = vld [vmem:[%s1811_s24 + $0x24] sm:$0xe] }
  0x78   : > { %731 = vrot.lane.b32.xlu2 %v696_v22, %s1747_s28  ;;  %v1211_v22 = vunpack.c.l.b16 %v1197_v8 }
  0x79   : > { %v415_v24 = vsel %vm367_vm1, %v410_v10, %v414_v11  ;;  %v2124_v10 = vld [vmem:[%s1811_s24 + $0x3c] sm:$0xf0]  ;;  %v645_v11 = vshll.u32 %v618_v59, 16 }
  0x7a   : > { %v2041_v36 = vpop.permute.xlu2 %597 }
  0x7b   : > { %599 = vrot.lane.b32.xlu1 %v1881_v25, %s1746_s27  ;;  %v1475_v25 = vld [vmem:[%s1811_s24 + $0x6c] sm:$0xff]   ;;  %v647_v23 = vrot.slane %v645_v11, 1  ;;  %v1702_v11 = vld [vmem:[%s1811_s24 + $0x3c] sm:$0xe] }
  0x7c   : > { %v968_v56 = vshll.u32 %v1475_v25, 16  ;;  %v966_v17 = vshrl.u32 %v1475_v25, 16 }
  0x7d   : > { %595 = vrot.lane.b32.xlu0 %v1825_v12, %s1746_s27  ;;  %v648_v15 = vsel %vm367_vm1, %v1887_v29, %v647_v23  ;;  %v896_v29 = vshll.u32 %v1463_v21, 16 }
  0x7e   : > { %v970_v18 = vrot.slane %v968_v56, 1  ;;  %v1039_v56 = vrot.slane %v2059_v61, 1 }
  0x80   : > { %799 = vrot.lane.b32.xlu2 %v784_v41, %s1748_s29  ;;  %v971_v30 = vor.u32 %v970_v18, %v966_v17  ;;  %v509_v41 = vrot.slane %v2037_v35, 1  ;;  %v1040_v61 = vsel %vm504_vm0, %v1038_v39, %v1039_v56  ;;  %v1585_v18 = vld [vmem:[%s1811_s24 + $0x18] sm:$0xf0] }
  0x82   : > { %v2062_v62 = vpop.permute.xlu2 %793  ;;  %v976_v55 = vsel %vm367_vm1, %v971_v30, %v975_v31 }
  0x83   : > { %795 = vrot.lane.b32.xlu1 %v778_v27, %s1748_s29  ;;  %v1691_v27 = vor.u32 %v1690_v60, %v2003_v2 }
  0x85   : > { %735 = vrot.lane.b32.xlu0 %v720_v34, %s1747_s28  ;;  %v508_v2 = vrot.slane %v1691_v27, 1  ;;  %v1589_v27 = vld [vmem:[%s1811_s24 + $0x30] sm:$0xe] }
  0x87   : > { %v510_v35 = vsel %vm504_vm0, %v508_v2, %v509_v41  ;;  %v765_v41 = vrot.slane %v618_v59, 1  ;;  %v898_v59 = vrot.slane %v896_v29, 1 }
  0x88   : > { %466 = vrot.lane.b32.xlu2 %v391_v13, %s1745_s26 }
  0x8a   : > { %v2081_v32 = vpop.permute.xlu2 %853 }
  0x8b   : > { %855 = vrot.lane.b32.xlu1 %v1475_v25, %s1749_s30  ;;  %v1214_v25 = vpack.c.b16 %v1211_v22, %v1211_v22  ;;  %v2138_v22 = vld [vmem:[%s1811_s24 + $0x24] sm:$0xf0] }
  0x8d   : > { %v2064_v4 = vpop.permute.xlu1 %537  ;;  %851 = vrot.lane.b32.xlu0 %v1471_v7, %s1749_s30  ;;  %v952_v7 = vsel %vm367_vm1, %v947_v63, %v951_v3  ;;  %v1236_v34 = vsel %vm1234_vm2, %v1214_v25, 0  ;;  %v669_v63 = vshll.u32 %v2109_v53, 16  ;;  %v2121_v3 = vld [vmem:[%s1811_s24 + $0x3c] sm:$0xff]   ;;  %v1587_v25 = vor.u32 %v1586_v19, %v1585_v18 }
  0x8e   : > { %1611 = vmatpush.bf16.msra.mxu3 %v1236_v34  ;;  %1610 = vmatpush.bf16.msra.mxu2 %v1236_v34  ;;  %v918_v51 = vshrl.u32 %v2121_v3, 16 }
  0x8f   : > { %v2072_v20 = vpop.permute.xlu0 %472  ;;  %1609 = vmatpush.bf16.msra.mxu1 %v1236_v34  ;;  %1243 = vmatpush.bf16.msra.mxu0 %v1236_v34  ;;  %v671_v13 = vrot.slane %v669_v63, 1  ;;  %v764_v2 = vrot.slane %v1587_v25, 1 }
  0x90   : > { %991 = vrot.lane.b32.xlu2 %v976_v55, %s1750_s4  ;;  %v1067_v39 = vsel %vm1057_vm3, %v1817_v5, %v2072_v20 }
  0x91   : > { %v672_v31 = vsel %vm367_vm1, %v1835_v26, %v671_v13  ;;  %v920_v26 = vshll.u32 %v2121_v3, 16 }
  0x92   : > { %1614 = vmatpush.bf16.msra.mxu3 %v1513_v46  ;;  %1613 = vmatpush.bf16.msra.mxu2 %v1513_v46  ;;  %v2107_v52 = vpop.permute.xlu2 %985 }
  0x93   : > { %987 = vrot.lane.b32.xlu1 %v952_v7, %s1750_s4  ;;  %1612 = vmatpush.bf16.msra.mxu1 %v1513_v46  ;;  %v1480_v7 = vld [vmem:[%s1811_s24 + $0x44] sm:$0x1]  ;;  %v922_v42 = vrot.slane %v920_v26, 1 }
  0x94   : > { %1244 = vmatpush.bf16.msra.mxu0 %v1513_v46  ;;  %v868_v34 = vunpack.c.l.b16 %v1480_v7  ;;  %v1700_v7 = vor.u32 %v1699_v50, %v2138_v22 }
  0x95   : > { %v2086_v38 = vpop.permute.xlu1 %541  ;;  %470 = vrot.lane.b32.xlu0 %v415_v24, %s1745_s26  ;;  %v1588_v24 = vld [vmem:[%s1811_s24 + $0x30] sm:$0xf0]  ;;  %s2294_s26 = scalar_lea.vmem %s2361_s3, %s1421_s12 }
  0x96   : > { %1617 = vmatpush.bf16.msra.mxu3 %v1512_v43  ;;  %1616 = vmatpush.bf16.msra.mxu2 %v1512_v43  ;;  %v1590_v40 = vor.u32 %v1589_v27, %v1588_v24  ;;  %v2153_v45 = vpack.c.b16 %v868_v34, %v868_v34  ;;  %v1020_v22 = vrot.slane %v1700_v7, 1 }
  0x97   : > { %v2095_v44 = vpop.permute.xlu0 %476  ;;  %1615 = vmatpush.bf16.msra.mxu1 %v1512_v43 }
  0x98   : > { %1245 = vmatpush.bf16.msra.mxu0 %v1512_v43  ;;  %1051 = vrot.lane.b32.xlu2 %v1034_v57, %s1751_s5  ;;  %v770_v47 = vrot.slane %v1590_v40, 1  ;;  %v925_v43 = vshll.u32 %v2153_v45, 16  ;;  %v1071_v53 = vsel %vm1057_vm3, %v1825_v12, %v2095_v44  ;;  %v894_v57 = vshrl.u32 %v1463_v21, 16 }
  0x99   : > { %v1088_v20 = vsel %vm1074_vm4, %v1071_v53, %v2086_v38  ;;  %v923_v12 = vor.u32 %v922_v42, %v918_v51  ;;  %v1027_v40 = vrot.slane %v2153_v45, 1 }
  0x9a   : > { %v2129_v17 = vpop.permute.xlu2 %533  ;;  %v772_v56 = vsel %vm504_vm0, %v770_v47, %v771_v48  ;;  %v927_v44 = vrot.slane %v925_v43, 1  ;;  %v899_v18 = vor.u32 %v898_v59, %v894_v57 }
  0x9b   : > { %535 = vrot.lane.b32.xlu1 %v516_v49, %s1744_s25  ;;  %v874_v49 = vpack.c.b16 %v866_v37, %v866_v37 }
  0x9c   : > { %v928_v27 = vsel %vm367_vm1, %v923_v12, %v927_v44 }
  0x9d   : > { %v2111_v28 = vpop.permute.xlu1 %733  ;;  %531 = vrot.lane.b32.xlu0 %v510_v35, %s1744_s25  ;;  %v766_v35 = vsel %vm504_vm0, %v764_v2, %v765_v41  ;;  %v901_v63 = vshll.u32 %v874_v49, 16 }
  0x9f   : > { %v2116_v60 = vpop.permute.xlu0 %729  ;;  %v903_v19 = vrot.slane %v901_v63, 1 }
  0xa0   : > { %591 = vrot.lane.b32.xlu2 %v1817_v5, %s1746_s27  ;;  %v1084_v5 = vsel %vm1074_vm4, %v1067_v39, %v2064_v4 }
  0xa1   : > { %v1101_v23 = vsel %vm1091_vm5, %v1084_v5, %v2020_v16  ;;  %v1703_v16 = vor.u32 %v1702_v11, %v2124_v10 }
  0xa2   : > { %v2151_v55 = vpop.permute.xlu2 %585  ;;  %v1118_v24 = vsel %vm1108_vm6, %v1101_v23, %v2116_v60 }
  0xa3   : > { %587 = vrot.lane.b32.xlu1 %v1860_v0, %s1746_s27 }
  0xa5   : > { %v2133_v8 = vpop.permute.xlu1 %849  ;;  %1055 = vrot.lane.b32.xlu0 %v1040_v61, %s1751_s5 }
  0xa7   : > { %v798_v30 = vpop.permute.xlu0 %797 }
  0xa8   : > { %787 = vrot.lane.b32.xlu2 %v766_v35, %s1748_s29 }
  0xaa   : > { %v2175_v61 = vpop.permute.xlu2 %725 }
  0xab   : > { %727 = vrot.lane.b32.xlu1 %v672_v31, %s1747_s28  ;;  %v1021_v31 = vrot.slane %v874_v49, 1 }
  0xad   : > { %v2156_v46 = vpop.permute.xlu1 %468  ;;  %723 = vrot.lane.b32.xlu0 %v648_v15, %s1747_s28  ;;  %v1022_v15 = vsel %vm504_vm0, %v1020_v22, %v1021_v31 }
  0xaf   : > { %v2161_v9 = vpop.permute.xlu0 %464 }
  0xb0   : > { %847 = vrot.lane.b32.xlu2 %v2121_v3, %s1749_s30  ;;  %v1059_v50 = vsel %vm1057_vm3, %v1865_v6, %v2161_v9 }
  0xb2   : > { %v842_v60 = vpop.permute.xlu2 %841 }
  0xb3   : > { %843 = vrot.lane.b32.xlu1 %v1463_v21, %s1749_s30  ;;  %v1105_v21 = vsel %vm1091_vm5, %v1088_v20, %v2041_v36  ;;  %v904_v36 = vsel %vm367_vm1, %v899_v18, %v903_v19 }
  0xb4   : > { %v1122_v38 = vsel %vm1108_vm6, %v1105_v21, %v2111_v28  ;;  %v1135_v28 = vsel %vm1125_vm7, %v1118_v24, %v2062_v62  ;;  %v1026_v62 = vrot.slane %v1703_v16, 1 }
  0xb5   : > { %v530_v13 = vpop.permute.xlu1 %529  ;;  %791 = vrot.lane.b32.xlu0 %v772_v56, %s1748_s29  ;;  %v1139_v25 = vsel %vm1125_vm7, %v1122_v38, %v798_v30  ;;  %v1152_v33 = vsel %vm1142_vm8, %v1135_v28, %v2133_v8 }
  0xb6   : > { %v1156_v3 = vsel %vm1142_vm8, %v1139_v25, %v2081_v32  ;;  %v1169_v8 = vsel %vm1159_vm10, %v1152_v33, %v2107_v52  ;;  %v1028_v2 = vsel %vm504_vm0, %v1026_v62, %v1027_v40  ;;  %v1063_v52 = vsel %vm1057_vm3, %v1860_v0, %v2156_v46 }
  0xb7   : > { %v990_v4 = vpop.permute.xlu0 %989  ;;  %v1080_v35 = vsel %vm1074_vm4, %v1063_v52, %v2129_v17  ;;  %v1076_v43 = vsel %vm1074_vm4, %v1059_v50, %v530_v13 }
  0xb8   : > { %v1173_v30 = vsel %vm1159_vm10, %v1156_v3, %v990_v4  ;;  %1043 = vrot.lane.b32.xlu2 %v1022_v15, %s1751_s5  ;;  %v1093_v0 = vsel %vm1091_vm5, %v1076_v43, %v2151_v55 }
  0xba   : > { %v982_v41 = vpop.permute.xlu2 %981 }
  0xbb   : > { %983 = vrot.lane.b32.xlu1 %v928_v27, %s1750_s4 }
  0xbd   : > { %v1054_v10 = vpop.permute.xlu1 %1053  ;;  %979 = vrot.lane.b32.xlu0 %v904_v36, %s1750_s4 }
  0xbe   : > { %v1190_v34 = vsel %vm1176_vm9, %v1173_v30, %v1054_v10 }
  0xbf   : > { %1507 = vmatmul.msk.bf16.vlgmr.msra.gmra.mxu3 %vm1217_vm11, %v1190_v34  ;;  %v1050_v37 = vpop.permute.xlu0 %1049 }
  0xc0   : > { %v1186_v32 = vsel %vm1176_vm9, %v1169_v8, %v1050_v37 }
  0xc1   : > { %1505 = vmatmul.msk.bf16.vlgmr.msra.gmra.mxu2 %vm1217_vm11, %v1186_v32 }
  0xc2   : > { %v475_v47 = vpop.permute.xlu2 %474 }
  0xc3   : > { %v1069_v4 = vsel %vm1057_vm3, %v1952_v54, %v475_v47 }
  0xc5   : > { %v722_v26 = vpop.permute.xlu1 %721  ;;  %1047 = vrot.lane.b32.xlu0 %v1028_v2, %s1751_s5 }
  0xc6   : > { %v1110_v17 = vsel %vm1108_vm6, %v1093_v0, %v722_v26 }
  0xc7   : > { %v590_v45 = vpop.permute.xlu0 %589 }
  0xc8   : > { %v1097_v51 = vsel %vm1091_vm5, %v1080_v35, %v590_v45 }
  0xc9   : > { %v1114_v53 = vsel %vm1108_vm6, %v1097_v51, %v2175_v61 }
  0xca   : > { %v544_v49 = vpop.permute.xlu2 %543 }
  0xcd   : > { %v790_v48 = vpop.permute.xlu1 %789 }
  0xce   : > { %v1131_v46 = vsel %vm1125_vm7, %v1114_v53, %v790_v48 }
  0xcf   : > { %v786_v29 = vpop.permute.xlu0 %785 }
  0xd0   : > { %v1127_v6 = vsel %vm1125_vm7, %v1110_v17, %v786_v29 }
  0xd1   : > { %v1144_v63 = vsel %vm1142_vm8, %v1127_v6, %v842_v60 }
  0xd2   : > { %v732_v9 = vpop.permute.xlu2 %731 }
  0xd5   : > { %v978_v42 = vpop.permute.xlu1 %977 }
  0xd6   : > { %v1161_v61 = vsel %vm1159_vm10, %v1144_v63, %v978_v42 }
  0xd7   : > { %v846_v39 = vpop.permute.xlu0 %845 }
  0xd8   : > { %v1148_v56 = vsel %vm1142_vm8, %v1131_v46, %v846_v39 }
  0xd9   : > { %v1165_v59 = vsel %vm1159_vm10, %v1148_v56, %v982_v41 }
  0xda   : > { %v800_v12 = vpop.permute.xlu2 %799 }
  0xdd   : > { %v1046_v57 = vpop.permute.xlu1 %1045 }
  0xde   : > { %v1182_v11 = vsel %vm1176_vm9, %v1165_v59, %v1046_v57 }
  0xdf   : > { %1503 = vmatmul.msk.bf16.vlgmr.msra.gmra.mxu1 %vm1217_vm11, %v1182_v11  ;;  %v1042_v55 = vpop.permute.xlu0 %1041 }
  0xe0   : > { %v1178_v5 = vsel %vm1176_vm9, %v1161_v61, %v1042_v55  ;;  %v2288_v61 = vld [vmem:[%s2360_s2] ss:$0 sm:$0xff] }
  0xe1   : > { %1501 = vmatmul.msk.bf16.vlgmr.msra.gmra.mxu0 %vm1217_vm11, %v1178_v5 }
  0xe2   : > { %v467_v19 = vpop.permute.xlu2 %466 }
  0xe3   : > { %v1061_v52 = vsel %vm1057_vm3, %v2000_v1, %v467_v19 }
  0xe5   : > { %v540_v20 = vpop.permute.xlu1 %539 }
  0xe6   : > { %v1086_v24 = vsel %vm1074_vm4, %v1069_v4, %v540_v20 }
  0xe7   : > { %v479_v44 = vpop.permute.xlu0 %478 }
  0xe8   : > { %v1073_v54 = vsel %vm1057_vm3, %v1957_v58, %v479_v44 }
  0xe9   : > { %v1090_v10 = vsel %vm1074_vm4, %v1073_v54, %v544_v49 }
  0xea   : > { %v992_v23 = vpop.permute.xlu2 %991 }
  0xed   : > { %v600_v13 = vpop.permute.xlu1 %599 }
  0xee   : > { %v1107_v34 = vsel %vm1091_vm5, %v1090_v10, %v600_v13 }
  0xef   : > { %v596_v18 = vpop.permute.xlu0 %595 }
  0xf0   : > { %v1103_v25 = vsel %vm1091_vm5, %v1086_v24, %v596_v18 }
  0xf1   : > { %v1120_v36 = vsel %vm1108_vm6, %v1103_v25, %v732_v9 }
  0xf2   : > { %v1052_v22 = vpop.permute.xlu2 %1051 }
  0xf5   : > { %v796_v7 = vpop.permute.xlu1 %795 }
  0xf6   : > { %v1137_v16 = vsel %vm1125_vm7, %v1120_v36, %v796_v7 }
  0xf7   : > { %v736_v21 = vpop.permute.xlu0 %735 }
  0xf8   : > { %v1124_v40 = vsel %vm1108_vm6, %v1107_v34, %v736_v21 }
  0xf9   : > { %v1141_v8 = vsel %vm1125_vm7, %v1124_v40, %v800_v12 }
  0xfa   : > { %v592_v15 = vpop.permute.xlu2 %591 }
  0xfd   : > { %v856_v38 = vpop.permute.xlu1 %855 }
  0xfe   : > { %v1158_v37 = vsel %vm1142_vm8, %v1141_v8, %v856_v38 }
  0xff   : > { %v852_v27 = vpop.permute.xlu0 %851  ;;  %v1175_v2 = vsel %vm1159_vm10, %v1158_v37, %v992_v23 }
 0x100   : > { %v1154_v31 = vsel %vm1142_vm8, %v1137_v16, %v852_v27 }
 0x102   : > { %v788_v58 = vpop.permute.xlu2 %787 }
 0x105   : > { %v988_v28 = vpop.permute.xlu1 %987 }
 0x106   : > { %v1171_v60 = vsel %vm1159_vm10, %v1154_v31, %v988_v28 }
 0x107   : > { %v471_v33 = vpop.permute.xlu0 %470  ;;  %v1188_v3 = vsel %vm1176_vm9, %v1171_v60, %v1052_v22 }
 0x108   : > { %1506 = vmatmul.msk.bf16.gmra.mxu2 %vm1217_vm11, %v1188_v3  ;;  %v1065_v42 = vsel %vm1057_vm3, %v2013_v14, %v471_v33 }
 0x10a   : > { %v848_v48 = vpop.permute.xlu2 %847 }
 0x10d   : > { %v536_v30 = vpop.permute.xlu1 %535 }
 0x10e   : > { %v1082_v43 = vsel %vm1074_vm4, %v1065_v42, %v536_v30 }
 0x10f   : > { %v532_v62 = vpop.permute.xlu0 %531  ;;  %v1099_v17 = vsel %vm1091_vm5, %v1082_v43, %v592_v15 }
 0x110   : > { %v1078_v49 = vsel %vm1074_vm4, %v1061_v52, %v532_v62 }
 0x112   : > { %v1044_v53 = vpop.permute.xlu2 %1043 }
 0x115   : > { %v588_v32 = vpop.permute.xlu1 %587 }
 0x116   : > { %v1095_v35 = vsel %vm1091_vm5, %v1078_v49, %v588_v32 }
 0x117   : > { %v1056_v41 = vpop.permute.xlu0 %1055 }
 0x118   : > { %v1192_v26 = vsel %vm1176_vm9, %v1175_v2, %v1056_v41 }
 0x119   : > { %1508 = vmatmul.msk.bf16.gmra.mxu3 %vm1217_vm11, %v1192_v26 }
 0x11d   : > { %v728_v47 = vpop.permute.xlu1 %727 }
 0x11e   : > { %v1116_v6 = vsel %vm1108_vm6, %v1099_v17, %v728_v47 }
 0x11f   : > { %v724_v45 = vpop.permute.xlu0 %723 }
 0x120   : > { %v1112_v51 = vsel %vm1108_vm6, %v1095_v35, %v724_v45 }
 0x121   : > { %v1129_v39 = vsel %vm1125_vm7, %v1112_v51, %v788_v58 }
 0x125   : > { %v844_v50 = vpop.permute.xlu1 %843 }
 0x126   : > { %v1146_v0 = vsel %vm1142_vm8, %v1129_v39, %v844_v50 }
 0x127   : > { %v792_v29 = vpop.permute.xlu0 %791 }
 0x128   : > { %v1133_v14 = vsel %vm1125_vm7, %v1116_v6, %v792_v29 }
 0x129   : > { %v1150_v57 = vsel %vm1142_vm8, %v1133_v14, %v848_v48 }
 0x12d   : > { %v984_v9 = vpop.permute.xlu1 %983 }
 0x12e   : > { %v1167_v59 = vsel %vm1159_vm10, %v1150_v57, %v984_v9 }
 0x12f   : > { %v980_v46 = vpop.permute.xlu0 %979 }
 0x130   : > { %v1163_v1 = vsel %vm1159_vm10, %v1146_v0, %v980_v46 }
 0x131   : > { %v1180_v56 = vsel %vm1176_vm9, %v1163_v1, %v1044_v53 }
 0x132   : > { %1502 = vmatmul.msk.bf16.gmra.mxu0 %vm1217_vm11, %v1180_v56 }
 0x137   : > { %v1048_v63 = vpop.permute.xlu0 %1047 }
 0x138   : > { %v1184_v11 = vsel %vm1176_vm9, %v1167_v59, %v1048_v63 }
 0x139   : > { %1504 = vmatmul.msk.bf16.gmra.mxu1 %vm1217_vm11, %v1184_v11 }
 0x142   : > { %v1277_v55 = vpop.f32.mrf.mxu3 }
 0x143   : > { %v1278_v5 = vadd.f32 %v2288_v61, %v1277_v55 }
 0x144   : > { %v1267_v20 = vpop.f32.mrf.mxu2 }
 0x145   : > { %v1299_v12 = vmax.f32 %v1278_v5, 0.0  ;;  %v1268_v44 = vadd.f32 %v2288_v61, %v1267_v20 }
 0x147   : > { %1315 = vst.msk [vmem:[%s2294_s26 + $0x60] sm:$0xff] %vm1074_vm4, %v1299_v12  ;;  %v1295_v13 = vmax.f32 %v1268_v44, 0.0 }
 0x149   : > { %1311 = vst.msk [vmem:[%s2294_s26 + $0x40] sm:$0xff] %vm1074_vm4, %v1295_v13 }
 0x14a   : > { %v1279_v18 = vpop.f32.mrf.mxu3 }
 0x14b   : > { %v1280_v19 = vadd.f32 %v2288_v61, %v1279_v18 }
 0x14c   : > { %v1269_v7 = vpop.f32.mrf.mxu2 }
 0x14d   : > { %v1300_v21 = vmax.f32 %v1280_v19, 0.0  ;;  %v1270_v23 = vadd.f32 %v2288_v61, %v1269_v7 }
 0x14f   : > { %1316 = vst.msk [vmem:[%s2294_s26 + $0x68] sm:$0xff] %vm1074_vm4, %v1300_v21  ;;  %v1296_v4 = vmax.f32 %v1270_v23, 0.0 }
 0x151   : > { %1312 = vst.msk [vmem:[%s2294_s26 + $0x48] sm:$0xff] %vm1074_vm4, %v1296_v4 }
 0x15c   : > { %v1257_v38 = vpop.f32.mrf.mxu1 }
 0x15d   : > { %v1258_v24 = vadd.f32 %v2288_v61, %v1257_v38 }
 0x15e   : > { %v1247_v27 = vpop.f32.mrf.mxu0 }
 0x15f   : > { %v1291_v25 = vmax.f32 %v1258_v24, 0.0  ;;  %v1248_v36 = vadd.f32 %v2288_v61, %v1247_v27 }
 0x161   : > { %1307 = vst.msk [vmem:[%s2294_s26 + $0x20] sm:$0xff] %vm1074_vm4, %v1291_v25  ;;  %v1287_v16 = vmax.f32 %v1248_v36, 0.0 }
 0x163   : > { %1303 = vst.msk [vmem:[%s2294_s26] sm:$0xff] %vm1074_vm4, %v1287_v16 }
 0x164   : > { %v1259_v22 = vpop.f32.mrf.mxu1 }
 0x165   : > { %v1260_v31 = vadd.f32 %v2288_v61, %v1259_v22 }
 0x166   : > { %v1249_v28 = vpop.f32.mrf.mxu0 }
 0x167   : > { %v1292_v60 = vmax.f32 %v1260_v31, 0.0  ;;  %v1250_v33 = vadd.f32 %v2288_v61, %v1249_v28 }
 0x169   : > { %1308 = vst.msk [vmem:[%s2294_s26 + $0x28] sm:$0xff] %vm1074_vm4, %v1292_v60  ;;  %v1288_v3 = vmax.f32 %v1250_v33, 0.0 }
 0x16b   : > { %1304 = vst.msk [vmem:[%s2294_s26 + $0x8] sm:$0xff] %vm1074_vm4, %v1288_v3 }
 0x18b   : > { %v1272_v54 = vpop.f32.mrf.mxu2 }
 0x18c   : > { %v1273_v30 = vadd.f32 %v2288_v61, %v1272_v54 }
 0x18e   : > { %v1297_v10 = vmax.f32 %v1273_v30, 0.0 }
 0x190   : > { %1313 = vst.msk [vmem:[%s2294_s26 + $0x50] sm:$0xff] %vm1074_vm4, %v1297_v10 }
 0x193   : > { %v1274_v34 = vpop.f32.mrf.mxu2 }
 0x194   : > { %v1275_v62 = vadd.f32 %v2288_v61, %v1274_v34 }
 0x196   : > { %v1298_v40 = vmax.f32 %v1275_v62, 0.0 }
 0x198   : > { %1314 = vst.msk [vmem:[%s2294_s26 + $0x58] sm:$0xff] %vm1074_vm4, %v1298_v40 }
 0x19c   : > { %v1282_v15 = vpop.f32.mrf.mxu3 }
 0x19d   : > { %v1283_v8 = vadd.f32 %v2288_v61, %v1282_v15 }
 0x19f   : > { %v1301_v37 = vmax.f32 %v1283_v8, 0.0 }
 0x1a1   : > { %1317 = vst.msk [vmem:[%s2294_s26 + $0x70] sm:$0xff] %vm1074_vm4, %v1301_v37 }
 0x1a4   : > { %v1284_v32 = vpop.f32.mrf.mxu3 }
 0x1a5   : > { %v1285_v2 = vadd.f32 %v2288_v61, %v1284_v32 }
 0x1a7   : > { %v1302_v41 = vmax.f32 %v1285_v2, 0.0 }
 0x1a9   : > { %1318 = vst.msk [vmem:[%s2294_s26 + $0x78] sm:$0xff] %vm1074_vm4, %v1302_v41 }
 0x1af   : > { %v1252_v26 = vpop.f32.mrf.mxu0 }
 0x1b0   : > { %v1253_v58 = vadd.f32 %v2288_v61, %v1252_v26 }
 0x1b2   : > { %v1289_v45 = vmax.f32 %v1253_v58, 0.0 }
 0x1b4   : > { %1305 = vst.msk [vmem:[%s2294_s26 + $0x10] sm:$0xff] %vm1074_vm4, %v1289_v45 }
 0x1b6   : > { %v1262_v47 = vpop.f32.mrf.mxu1 }
 0x1b7   : > { %v1263_v48 = vadd.f32 %v2288_v61, %v1262_v47  ;;  %v1254_v29 = vpop.f32.mrf.mxu0 }
 0x1b8   : > { %v1255_v52 = vadd.f32 %v2288_v61, %v1254_v29 }
 0x1b9   : > { %v1293_v49 = vmax.f32 %v1263_v48, 0.0 }
 0x1ba   : > { %v1290_v35 = vmax.f32 %v1255_v52, 0.0 }
 0x1bb   : > { %1309 = vst.msk [vmem:[%s2294_s26 + $0x30] sm:$0xff] %vm1074_vm4, %v1293_v49 }
 0x1bc   : > { %1306 = vst.msk [vmem:[%s2294_s26 + $0x18] sm:$0xff] %vm1074_vm4, %v1290_v35 }
 0x1be   : > { %v1264_v50 = vpop.f32.mrf.mxu1 }
 0x1bf   : > { %v1265_v51 = vadd.f32 %v2288_v61, %v1264_v50 }
 0x1c1   : > { %v1294_v42 = vmax.f32 %v1265_v51, 0.0 }
 0x1c3   : > { %1310 = vst.msk [vmem:[%s2294_s26 + $0x38] sm:$0xff] %vm1074_vm4, %v1294_v42 }
 0x1c4 PF: > { %s13_s16 = sadd.s32 1, %s1742_s16   ;;  %s2362_s12 = smov %s1734_s14 }
 0x1c5   : > { %p10_p7 = scmp.ge.s32.totalorder %s13_s16, 6   ;;  %s2363_s13 = smov %s1738_s15 }
 0x1c6   : > { %s2364_s14 = smov %s2367_s17  ;;  %s2365_s15 = smov %s2371_s18 }
 0x1c7   :  { %12 = sbr.rel (!%p10_p7) target bundleno = 3 (0x3), region = 65 }

</bundles_post_ra>
